<compile_context>
chip_gen: v6e
topology: v6e:2x2x1
jax: 0.10.0
libtpu: 0.0.40
codegen_flags: <defaults>
</compile_context>

<pallas_src>
import functools
import math

import jax
import jax.numpy as jnp
from jax.experimental import pallas as pl
from jax.experimental.pallas import tpu as pltpu


def _weight_adapter_kernel(xp_ref, w1p_ref, w2p_ref, op_ref, *, scalar):
    # xp_ref:  (BR, P*C)   P batch samples packed per row (lane-dense)
    # w1p_ref: (P*C, P*H)  block-diag kron(I_P, (scalar*W1).T)   -- grid-invariant
    # w2p_ref: (P*H, P*C)  block-diag kron(I_P, W2.T)            -- grid-invariant
    # op_ref:  (BR, P*C)
    x = xp_ref[...].astype(jnp.float32)
    # fc[0] + ReLU:  h = relu((scalar*x) @ W1.T), computed per packed sample.
    h = jnp.dot(x, w1p_ref[...], preferred_element_type=jnp.float32)
    h = jnp.maximum(h, 0.0)                                   # (BR, P*H)
    # fc[2] + ReLU.
    y = jnp.dot(h, w2p_ref[...], preferred_element_type=jnp.float32)
    y = jnp.maximum(y, 0.0)                                   # (BR, P*C)
    # Sigmoid gate applied to the SCALED inputs (scalar re-applied here; it was folded into W1
    # for the matmul path only).
    op_ref[...] = (jax.nn.sigmoid(y) * (scalar * x)).astype(op_ref.dtype)


def _default_block_rows(rows, lane_w, itemsize):
    """~2 MiB per streamed tile buffer, multiple of 8 sublanes, capped by the array itself."""
    target = max(8, (((2 << 20) // (lane_w * itemsize)) // 8) * 8)
    rows8 = ((rows + 7) // 8) * 8
    return int(max(8, min(target, rows8, 4096)))


def weight_adapter(x, w1, w2, *, scalar=10.0, block_rows=None):
    """Drop-in equivalent of the PyTorch module: x is (N, C), returns (N, C)."""
    n, c = x.shape
    hid, c_in = w1.shape
    assert c_in == c and w2.shape == (c, hid), "weights must be (C//r, C) and (C, C//r)"

    # Pack P samples per row so the streamed lane width P*C is a multiple of 128.
    p = 128 // math.gcd(c, 128)
    lane_w = p * c

    pad = (-n) % p
    xp = jnp.pad(x, ((0, pad), (0, 0))) if pad else x
    rows = (n + pad) // p
    xp = xp.reshape(rows, lane_w)                      # free reshape of contiguous row-major x

    # Block-diagonal packed weights; fold the input scalar into the first layer.
    # (In a real model these are weight-only and should be hoisted to setup time.)
    eye = jnp.eye(p, dtype=jnp.float32)
    w1p = jnp.kron(eye, (jnp.float32(scalar) * w1.astype(jnp.float32)).T)   # (P*C, P*H)
    w2p = jnp.kron(eye, w2.astype(jnp.float32).T)                            # (P*H, P*C)

    itemsize = jnp.dtype(x.dtype).itemsize
    if block_rows is None:
        block_rows = _default_block_rows(rows, lane_w, itemsize)
    grid_r = pl.cdiv(rows, block_rows)

    # Explicit VMEM budget: double-buffered x/out tiles + resident weights + f32 intermediates.
    tile_bytes = 2 * 2 * block_rows * lane_w * itemsize
    weight_bytes = 2 * 4 * (int(w1p.size) + int(w2p.size))
    interm_bytes = 4 * block_rows * (lane_w + p * hid) * 4
    vmem_limit = int(min(32 << 20,
                         max(16 << 20, tile_bytes + weight_bytes + interm_bytes + (4 << 20))))

    kernel = functools.partial(_weight_adapter_kernel, scalar=float(scalar))

    out_p = pl.pallas_call(
        kernel,
        out_shape=jax.ShapeDtypeStruct((rows, lane_w), x.dtype),
        grid_spec=pltpu.PrefetchScalarGridSpec(
            num_scalar_prefetch=0,
            grid=(grid_r,),
            in_specs=[
                pl.BlockSpec((block_rows, lane_w), lambda i: (i, 0)),   # packed x tile
                pl.BlockSpec((lane_w, p * hid), lambda i: (0, 0)),       # kron(I, scalar*W1.T)
                pl.BlockSpec((p * hid, lane_w), lambda i: (0, 0)),       # kron(I, W2.T)
            ],
            out_specs=pl.BlockSpec((block_rows, lane_w), lambda i: (i, 0)),
        ),
        compiler_params=pltpu.CompilerParams(
            dimension_semantics=("parallel",),   # independent batch tiles -> pipeline + megacore
            vmem_limit_bytes=vmem_limit,
        ),
    )(xp, w1p, w2p)

    out = out_p.reshape(rows * p, c)
    return out[:n] if pad else out


def weight_adapter_ref(x, w1, w2, *, scalar=10.0):
    xs = scalar * x
    hidden = jnp.maximum(xs @ w1.T, 0.0)
    y = jnp.maximum(hidden @ w2.T, 0.0)
    return jax.nn.sigmoid(y) * xs


if __name__ == "__main__":
    key = jax.random.PRNGKey(0)
    k_x, k_w1, k_w2 = jax.random.split(key, 3)

    # Shapes consistent with the module: c_in=32, reduction=4 -> hidden=8.
    batch, c_in, reduction, scalar = 1024, 32, 4, 10.0
    hidden = c_in // reduction

    x = jax.random.normal(k_x, (batch, c_in), dtype=jnp.float32)
    w1 = jax.random.normal(k_w1, (hidden, c_in), dtype=jnp.float32) * (1.0 / jnp.sqrt(c_in))
    w2 = jax.random.normal(k_w2, (c_in, hidden), dtype=jnp.float32) * (1.0 / jnp.sqrt(hidden))

    out = jax.block_until_ready(weight_adapter(x, w1, w2, scalar=scalar))
    ref = weight_adapter_ref(x, w1, w2, scalar=scalar)
    assert out.shape == (batch, c_in)
    # MXU f32 matmuls on TPU may round operands (bf16 passes); compare at a lenient tolerance.
    assert jnp.allclose(out, ref, atol=1e-1, rtol=1e-1), "mismatch vs reference"

    # Multi-step grid path (exercises the software pipeline / megacore sharding).
    out_tiled = jax.block_until_ready(
        weight_adapter(x, w1, w2, scalar=scalar, block_rows=64))
    assert jnp.allclose(out_tiled, out, atol=1e-5, rtol=1e-5)

    # bf16 HBM-streaming path (halves x/out traffic; compute stays f32 inside the kernel).
    out_bf16 = jax.block_until_ready(
        weight_adapter(x.astype(jnp.bfloat16), w1, w2, scalar=scalar))
    assert out_bf16.dtype == jnp.bfloat16
    assert jnp.allclose(out_bf16.astype(jnp.float32), out, atol=2e-1, rtol=1e-1)

    # Ragged batch (N not a multiple of the packing factor) -> padded + sliced path.
    xr = x[: batch - 3]
    out_r = jax.block_until_ready(weight_adapter(xr, w1, w2, scalar=scalar))
    assert out_r.shape == (batch - 3, c_in)
    assert jnp.allclose(out_r, ref[: batch - 3], atol=1e-1, rtol=1e-1)

    print("KERNEL_OK")
</pallas_src>

<mosaic_0001>
module attributes {stable_mosaic.version = 11 : i64} {
  func.func @_weight_adapter_kernel(%arg0: i32, %arg1: memref<256x128xf32, #tpu.memory_space<vmem>>, %arg2: memref<128x32xf32, #tpu.memory_space<vmem>>, %arg3: memref<32x128xf32, #tpu.memory_space<vmem>>, %arg4: memref<256x128xf32, #tpu.memory_space<vmem>>) attributes {dimension_semantics = [#tpu.dimension_semantics<parallel>], iteration_bounds = array<i64: 1>, scalar_prefetch = 0 : i64, scratch_operands = 0 : i64, tpu.core_type = #tpu.core_type<tc>, window_params = [{transform_indices = @transform_0, window_bounds = array<i64: 256, 128>}, {pipeline_mode = #tpu.pipeline_mode<synchronous>, transform_indices = @transform_1, window_bounds = array<i64: 128, 32>}, {pipeline_mode = #tpu.pipeline_mode<synchronous>, transform_indices = @transform_2, window_bounds = array<i64: 32, 128>}, {transform_indices = @transform_3, window_bounds = array<i64: 256, 128>}]} {
    %c0 = arith.constant 0 : index
    %c0_0 = arith.constant 0 : index
    %0 = vector.load %arg1[%c0, %c0_0] : memref<256x128xf32, #tpu.memory_space<vmem>>, vector<256x128xf32>
    %c0_1 = arith.constant 0 : index
    %c0_2 = arith.constant 0 : index
    %1 = vector.load %arg2[%c0_1, %c0_2] : memref<128x32xf32, #tpu.memory_space<vmem>>, vector<128x32xf32>
    %cst = arith.constant dense<0.000000e+00> : vector<256x32xf32>
    %2 = tpu.matmul %0, %1, %cst {dimension_numbers = #tpu.dot_dimension_numbers<[1], [0], [0], [1], [0, 0, 1, 1], [], []>} : vector<256x128xf32>, vector<128x32xf32>, vector<256x32xf32> -> vector<256x32xf32>
    %cst_3 = arith.constant 0.000000e+00 : f32
    %3 = vector.broadcast %cst_3 : f32 to vector<256x32xf32>
    %4 = arith.maximumf %2, %3 : vector<256x32xf32>
    %c0_4 = arith.constant 0 : index
    %c0_5 = arith.constant 0 : index
    %5 = vector.load %arg3[%c0_4, %c0_5] : memref<32x128xf32, #tpu.memory_space<vmem>>, vector<32x128xf32>
    %cst_6 = arith.constant dense<0.000000e+00> : vector<256x128xf32>
    %6 = tpu.matmul %4, %5, %cst_6 {dimension_numbers = #tpu.dot_dimension_numbers<[1], [0], [0], [1], [0, 0, 1, 1], [], []>} : vector<256x32xf32>, vector<32x128xf32>, vector<256x128xf32> -> vector<256x128xf32>
    %cst_7 = arith.constant 0.000000e+00 : f32
    %7 = vector.broadcast %cst_7 : f32 to vector<256x128xf32>
    %8 = arith.maximumf %6, %7 : vector<256x128xf32>
    %9 = arith.negf %8 : vector<256x128xf32>
    %10 = math.exp %9 : vector<256x128xf32>
    %cst_8 = arith.constant 1.000000e+00 : f32
    %11 = vector.broadcast %cst_8 : f32 to vector<256x128xf32>
    %12 = arith.addf %11, %10 : vector<256x128xf32>
    %13 = arith.divf %11, %12 : vector<256x128xf32>
    %cst_9 = arith.constant 1.000000e+01 : f32
    %14 = vector.broadcast %cst_9 : f32 to vector<256x128xf32>
    %15 = arith.mulf %14, %0 : vector<256x128xf32>
    %16 = arith.mulf %13, %15 : vector<256x128xf32>
    %c0_10 = arith.constant 0 : index
    %c0_11 = arith.constant 0 : index
    %17 = vector.load %arg4[%c0_10, %c0_11] : memref<256x128xf32, #tpu.memory_space<vmem>>, vector<256x128xf32>
    tpu.vector_store %arg4[%c0_10, %c0_11], %16 {strides = array<i32>} : memref<256x128xf32, #tpu.memory_space<vmem>>, vector<256x128xf32>,
    return
  }
  func.func @transform_0(%arg0: i32) -> (i32, i32) {
    %c0_i32 = arith.constant 0 : i32
    %c0_i32_0 = arith.constant 0 : i32
    return %arg0, %c0_i32 : i32, i32
  }
  func.func @transform_1(%arg0: i32) -> (i32, i32) {
    %c0_i32 = arith.constant 0 : i32
    %c0_i32_0 = arith.constant 0 : i32
    %c0_i32_1 = arith.constant 0 : i32
    return %c0_i32, %c0_i32_0 : i32, i32
  }
  func.func @transform_2(%arg0: i32) -> (i32, i32) {
    %c0_i32 = arith.constant 0 : i32
    %c0_i32_0 = arith.constant 0 : i32
    %c0_i32_1 = arith.constant 0 : i32
    return %c0_i32, %c0_i32_0 : i32, i32
  }
  func.func @transform_3(%arg0: i32) -> (i32, i32) {
    %c0_i32 = arith.constant 0 : i32
    %c0_i32_0 = arith.constant 0 : i32
    return %arg0, %c0_i32 : i32, i32
  }
}

</mosaic_0001>

<bundles_post_ra>
// kernel: tpu_custom_call.1
= control target key start
LH: loop header
LB: loop body
LE: loop exit
PB: predicated region body
PF: predicated region fallthrough
CT: control target
= control target key end

     0   :  { %8 = vsyncpa [#allocation3], 0  ;;  %s1713_s0 = inlined_call_operand.hbm [shape: f32[256,128], index: 0, kind: input, shape index: {}]   ;;  %s1714_s1 = inlined_call_operand.vmem [shape: f32[128,32], index: 1, kind: input, shape index: {}]   ;;  %s1715_s2 = inlined_call_operand.vmem [shape: f32[32,128], index: 2, kind: input, shape index: {}]   ;;  %s1716_s3 = inlined_call_operand.hbm [shape: f32[256,128], index: 3, kind: output, shape index: {}]  }
   0x1   :  { %9 = vsyncpa [#allocation4], 0  ;;  %s1457_s12 = smov [#allocation2]  }
   0x2   :  { %s15_s13 = sshll.u32 %s1457_s12, 4  ;;  %s16_s13 = int_to_ptr.vmem [resolvable:$true] %s15_s13 }
   0x3   :  { %s1421_s14 = scalar_lea.vmem %s16_s13, 4096  ;;  %p1426_p1 = scmp.lt.s32.totalorder %s16_s13, %s16_s13 }
   0x4   :  { %p1422_p0 = scmp.ne.s32.totalorder %s16_s13, %s1421_s14  ;;  %p1427_p2 = scmp.lt.s32.totalorder %s1421_s14, %s1421_s14 }
   0x6   :  { %p1428_p3 = por %p1427_p2, %p1426_p1 }
   0x8   :  { %p1429_p4 = pnand %p1428_p3, %p1422_p0 }
   0xa   :  { %1432 = shalt.err (!%p1429_p4)
}
   0xb   :  { %s1458_s15 = smov 128   ;;  %s1459_s16 = smov 8  }
   0xc   :  { %21 = dma.hbm_to_vmem [thread:$0]  %s1713_s0, 4096, %s16_s13, [#allocation3], %s1458_s15, %s1458_s15, %s1459_s16  }
   0xd   :  { %1453 = dma.done.wait [#allocation3], 4096  }
   0xe   :  { %1454 = vsyncadd [#allocation3], 4294963200  ;;  %v76_v0 = vld [vmem:[%s1714_s1 + $0x78] sm:$0xff]  ;;  %v75_v1 = vld [vmem:[%s1714_s1 + $0x70] sm:$0xff]  ;;  %vm338_vm0 = vcmask 261120  }
   0xf   :  { %1145 = vmatprep.subr.mxu0 %v76_v0  ;;  %v74_v2 = vld [vmem:[%s1714_s1 + $0x68] sm:$0xff]  ;;  %v73_v3 = vld [vmem:[%s1714_s1 + $0x60] sm:$0xff]  ;;  %v72_v5 = vld [vmem:[%s1714_s1 + $0x58] sm:$0xff] }
  0x10   :  { %1146 = vmatpush3.msra.mxu0 %v76_v0  ;;  %v1499_v4 = vld [vmem:[#allocation2] sm:$0xff]  ;;  %v71_v6 = vld [vmem:[%s1714_s1 + $0x50] sm:$0xff]  ;;  %v70_v7 = vld [vmem:[%s1714_s1 + $0x48] sm:$0xff] }
  0x11   :  { %1147 = vmatprep.subr.mxu0 %v75_v1  ;;  %1177 = vmatprep.mubr.f32.mxu0 %v1499_v4  ;;  %v69_v8 = vld [vmem:[%s1714_s1 + $0x40] sm:$0xff]  ;;  %v68_v9 = vld [vmem:[%s1714_s1 + $0x38] sm:$0xff]  ;;  %v67_v10 = vld [vmem:[%s1714_s1 + $0x30] sm:$0xff] }
  0x12   :  { %1148 = vmatpush3.msra.mxu0 %v75_v1  ;;  %v337_v11 = vld [vmem:[%s1715_s2 + $0x18] sm:$0xff]  ;;  %v66_v12 = vld [vmem:[%s1714_s1 + $0x28] sm:$0xff]  ;;  %v65_v13 = vld [vmem:[%s1714_s1 + $0x20] sm:$0xff] }
  0x13   :  { %1149 = vmatprep.subr.mxu0 %v74_v2  ;;  %1225 = vmatprep.subr.mxu1 %v337_v11  ;;  %v64_v14 = vld [vmem:[%s1714_s1 + $0x18] sm:$0xff]  ;;  %v63_v15 = vld [vmem:[%s1714_s1 + $0x10] sm:$0xff]  ;;  %v62_v16 = vld [vmem:[%s1714_s1 + $0x8] sm:$0xff] }
  0x14   :  { %1150 = vmatpush3.msra.mxu0 %v74_v2  ;;  %1226 = vmatpush3.msra.mxu1 %v337_v11  ;;  %v61_v17 = vld [vmem:[%s1714_s1] sm:$0xff]  ;;  %v1541_v18 = vld [vmem:[#allocation2 + $0x8] sm:$0xff]  ;;  %v1543_v19 = vld [vmem:[#allocation2 + $0x10] sm:$0xff] }
  0x15   :  { %1151 = vmatprep.subr.mxu0 %v73_v3  ;;  %v1547_v20 = vld [vmem:[#allocation2 + $0x18] sm:$0xff]  ;;  %v1549_v21 = vld [vmem:[#allocation2 + $0x20] sm:$0xff]  ;;  %v1553_v22 = vld [vmem:[#allocation2 + $0x28] sm:$0xff] }
  0x16   :  { %1152 = vmatpush3.msra.mxu0 %v73_v3  ;;  %v1555_v23 = vld [vmem:[#allocation2 + $0x30] sm:$0xff]  ;;  %v1559_v24 = vld [vmem:[#allocation2 + $0x38] sm:$0xff]  ;;  %v1561_v25 = vld [vmem:[#allocation2 + $0x40] sm:$0xff] }
  0x17   :  { %1153 = vmatprep.subr.mxu0 %v72_v5  ;;  %v1565_v26 = vld [vmem:[#allocation2 + $0x48] sm:$0xff]  ;;  %v1567_v27 = vld [vmem:[#allocation2 + $0x50] sm:$0xff]  ;;  %v1571_v28 = vld [vmem:[#allocation2 + $0x58] sm:$0xff] }
  0x18   :  { %1154 = vmatpush3.msra.mxu0 %v72_v5  ;;  %v1573_v29 = vld [vmem:[#allocation2 + $0x60] sm:$0xff]  ;;  %v1577_v30 = vld [vmem:[#allocation2 + $0x68] sm:$0xff]  ;;  %v1579_v31 = vld [vmem:[#allocation2 + $0x70] sm:$0xff] }
  0x19   :  { %1155 = vmatprep.subr.mxu0 %v71_v6  ;;  %v1583_v32 = vld [vmem:[#allocation2 + $0x78] sm:$0xff]  ;;  %v1585_v33 = vld [vmem:[#allocation2 + $0x80] sm:$0xff]  ;;  %v1589_v34 = vld [vmem:[#allocation2 + $0x88] sm:$0xff] }
  0x1a   :  { %1156 = vmatpush3.msra.mxu0 %v71_v6  ;;  %v1591_v35 = vld [vmem:[#allocation2 + $0x90] sm:$0xff]  ;;  %v1595_v36 = vld [vmem:[#allocation2 + $0x98] sm:$0xff]  ;;  %v1597_v37 = vld [vmem:[#allocation2 + $0xa0] sm:$0xff] }
  0x1b   :  { %1157 = vmatprep.subr.mxu0 %v70_v7  ;;  %v1601_v38 = vld [vmem:[#allocation2 + $0xa8] sm:$0xff]  ;;  %v1603_v39 = vld [vmem:[#allocation2 + $0xb0] sm:$0xff]  ;;  %v1607_v40 = vld [vmem:[#allocation2 + $0xb8] sm:$0xff] }
  0x1c   :  { %1158 = vmatpush3.msra.mxu0 %v70_v7  ;;  %v1609_v41 = vld [vmem:[#allocation2 + $0xc0] sm:$0xff]  ;;  %v1613_v42 = vld [vmem:[#allocation2 + $0xc8] sm:$0xff]  ;;  %v1615_v43 = vld [vmem:[#allocation2 + $0xd0] sm:$0xff] }
  0x1d   :  { %1159 = vmatprep.subr.mxu0 %v69_v8  ;;  %v1619_v44 = vld [vmem:[#allocation2 + $0xd8] sm:$0xff]  ;;  %v1621_v45 = vld [vmem:[#allocation2 + $0xe0] sm:$0xff]  ;;  %v1625_v46 = vld [vmem:[#allocation2 + $0xe8] sm:$0xff] }
  0x1e   :  { %1160 = vmatpush3.msra.mxu0 %v69_v8  ;;  %v1627_v47 = vld [vmem:[#allocation2 + $0xf0] sm:$0xff]  ;;  %v1631_v48 = vld [vmem:[#allocation2 + $0xf8] sm:$0xff]  ;;  %v335_v50 = vld [vmem:[%s1715_s2 + $0x8] sm:$0xff] }
  0x1f   :  { %1161 = vmatprep.subr.mxu0 %v68_v9  ;;  %v336_v49 = vld [vmem:[%s1715_s2 + $0x10] sm:$0xff]  ;;  %v334_v51 = vld [vmem:[%s1715_s2] sm:$0xff]  ;;  %s1460_s2 = smov [#allocation5]  }
  0x20   :  { %1162 = vmatpush3.msra.mxu0 %v68_v9  ;;  %1227 = vmatprep.subr.mxu1 %v336_v49  ;;  %s985_s4 = sshll.u32 %s1460_s2, 4  ;;  %s986_s4 = int_to_ptr.vmem [resolvable:$true] %s985_s4 }
  0x21   :  { %1163 = vmatprep.subr.mxu0 %v67_v10  ;;  %1228 = vmatpush3.msra.mxu1 %v336_v49  ;;  %s1433_s5 = scalar_lea.vmem %s986_s4, 4096  ;;  %p1438_p6 = scmp.lt.s32.totalorder %s986_s4, %s986_s4 }
  0x22   :  { %1164 = vmatpush3.msra.mxu0 %v67_v10  ;;  %1229 = vmatprep.subr.mxu1 %v335_v50  ;;  %p1434_p5 = scmp.ne.s32.totalorder %s986_s4, %s1433_s5  ;;  %p1439_p7 = scmp.lt.s32.totalorder %s1433_s5, %s1433_s5 }
  0x23   :  { %1165 = vmatprep.subr.mxu0 %v66_v12  ;;  %1230 = vmatpush3.msra.mxu1 %v335_v50 }
  0x24   :  { %1166 = vmatpush3.msra.mxu0 %v66_v12  ;;  %1231 = vmatprep.subr.mxu1 %v334_v51  ;;  %p1440_p8 = por %p1439_p7, %p1438_p6 }
  0x25   :  { %1167 = vmatprep.subr.mxu0 %v65_v13  ;;  %1232 = vmatpush3.msra.mxu1 %v334_v51 }
  0x26   :  { %1168 = vmatpush3.msra.mxu0 %v65_v13  ;;  %p1441_p9 = pnand %p1440_p8, %p1434_p5 }
  0x27   :  { %1169 = vmatprep.subr.mxu0 %v64_v14 }
  0x28   :  { %1170 = vmatpush3.msra.mxu0 %v64_v14 }
  0x29   :  { %1171 = vmatprep.subr.mxu0 %v63_v15 }
  0x2a   :  { %1172 = vmatpush3.msra.mxu0 %v63_v15 }
  0x2b   :  { %1173 = vmatprep.subr.mxu0 %v62_v16 }
  0x2c   :  { %1174 = vmatpush3.msra.mxu0 %v62_v16 }
  0x2d   :  { %1175 = vmatprep.subr.mxu0 %v61_v17 }
  0x2e   :  { %1176 = vmatpush3.msra.mxu0 %v61_v17 }
  0x2f   :  { %1178 = vmatmul.mubr.f32.vlgmr.msra.gmra.mxu0 %v1541_v18 }
  0x30   :  { %1180 = vmatprep.mubr.f32.mxu0 %v1543_v19 }
  0x33   :  { %1181 = vmatmul.mubr.f32.gmra.mxu0 %v1547_v20 }
  0x34   :  { %1183 = vmatprep.mubr.f32.mxu0 %v1549_v21 }
  0x37   :  { %1184 = vmatmul.mubr.f32.gmra.mxu0 %v1553_v22 }
  0x38   :  { %1186 = vmatprep.mubr.f32.mxu0 %v1555_v23 }
  0x3b   :  { %1187 = vmatmul.mubr.f32.gmra.mxu0 %v1559_v24 }
  0x3c   :  { %1189 = vmatprep.mubr.f32.mxu0 %v1561_v25 }
  0x3f   :  { %1190 = vmatmul.mubr.f32.gmra.mxu0 %v1565_v26 }
  0x40   :  { %1192 = vmatprep.mubr.f32.mxu0 %v1567_v27 }
  0x43   :  { %1193 = vmatmul.mubr.f32.gmra.mxu0 %v1571_v28 }
  0x44   :  { %1195 = vmatprep.mubr.f32.mxu0 %v1573_v29 }
  0x47   :  { %1196 = vmatmul.mubr.f32.gmra.mxu0 %v1577_v30 }
  0x48   :  { %1198 = vmatprep.mubr.f32.mxu0 %v1579_v31 }
  0x4b   :  { %1199 = vmatmul.mubr.f32.gmra.mxu0 %v1583_v32 }
  0x4c   :  { %1201 = vmatprep.mubr.f32.mxu0 %v1585_v33 }
  0x4f   :  { %1202 = vmatmul.mubr.f32.gmra.mxu0 %v1589_v34 }
  0x50   :  { %1204 = vmatprep.mubr.f32.mxu0 %v1591_v35 }
  0x53   :  { %1205 = vmatmul.mubr.f32.gmra.mxu0 %v1595_v36 }
  0x54   :  { %1207 = vmatprep.mubr.f32.mxu0 %v1597_v37 }
  0x57   :  { %1208 = vmatmul.mubr.f32.gmra.mxu0 %v1601_v38 }
  0x58   :  { %1210 = vmatprep.mubr.f32.mxu0 %v1603_v39 }
  0x5b   :  { %1211 = vmatmul.mubr.f32.gmra.mxu0 %v1607_v40 }
  0x5c   :  { %1213 = vmatprep.mubr.f32.mxu0 %v1609_v41 }
  0x5f   :  { %1214 = vmatmul.mubr.f32.gmra.mxu0 %v1613_v42 }
  0x60   :  { %1216 = vmatprep.mubr.f32.mxu0 %v1615_v43 }
  0x63   :  { %1217 = vmatmul.mubr.f32.gmra.mxu0 %v1619_v44 }
  0x64   :  { %1219 = vmatprep.mubr.f32.mxu0 %v1621_v45 }
  0x67   :  { %1220 = vmatmul.mubr.f32.gmra.mxu0 %v1625_v46 }
  0x68   :  { %1222 = vmatprep.mubr.f32.mxu0 %v1627_v47 }
  0x6b   :  { %1223 = vmatmul.mubr.f32.gmra.mxu0 %v1631_v48 }
  0xef   :  { %v1179_v52 = vpop.f32.mrf.mxu0 }
  0xf0   :  { %v303_v55 = vmax.f32 %v1179_v52, 0.0 }
  0xf1   :  { %v143_v53 = vpop.f32.mrf.mxu0 }
  0xf2   :  { %v302_v54 = vmax.f32 %v143_v53, 0.0 }
  0xf3   :  { %v1182_v56 = vpop.f32.mrf.mxu0 }
  0xf4   :  { %1233 = vmatprep.mubr.msk.f32.mxu1 %vm338_vm0, %v302_v54  ;;  %v305_v59 = vmax.f32 %v1182_v56, 0.0 }
  0xf5   :  { %v153_v57 = vpop.f32.mrf.mxu0  ;;  %1234 = vmatmul.mubr.msk.f32.vlgmr.msra.gmra.mxu1 %vm338_vm0, %v303_v55 }
  0xf6   :  { %v304_v58 = vmax.f32 %v153_v57, 0.0 }
  0xf7   :  { %v1185_v60 = vpop.f32.mrf.mxu0 }
  0xf8   :  { %1236 = vmatprep.mubr.msk.f32.mxu1 %vm338_vm0, %v304_v58  ;;  %v307_v63 = vmax.f32 %v1185_v60, 0.0 }
  0xf9   :  { %v163_v61 = vpop.f32.mrf.mxu0  ;;  %1237 = vmatmul.mubr.msk.f32.gmra.mxu1 %vm338_vm0, %v305_v59 }
  0xfa   :  { %v306_v62 = vmax.f32 %v163_v61, 0.0 }
  0xfb   :  { %v1188_v0 = vpop.f32.mrf.mxu0 }
  0xfc   :  { %1239 = vmatprep.mubr.msk.f32.mxu1 %vm338_vm0, %v306_v62  ;;  %v309_v3 = vmax.f32 %v1188_v0, 0.0 }
  0xfd   :  { %v173_v1 = vpop.f32.mrf.mxu0  ;;  %1240 = vmatmul.mubr.msk.f32.gmra.mxu1 %vm338_vm0, %v307_v63 }
  0xfe   :  { %v308_v2 = vmax.f32 %v173_v1, 0.0 }
  0xff   :  { %v1191_v5 = vpop.f32.mrf.mxu0 }
 0x100   :  { %1242 = vmatprep.mubr.msk.f32.mxu1 %vm338_vm0, %v308_v2  ;;  %v311_v8 = vmax.f32 %v1191_v5, 0.0 }
 0x101   :  { %v183_v6 = vpop.f32.mrf.mxu0  ;;  %1243 = vmatmul.mubr.msk.f32.gmra.mxu1 %vm338_vm0, %v309_v3 }
 0x102   :  { %v310_v7 = vmax.f32 %v183_v6, 0.0 }
 0x103   :  { %v1194_v9 = vpop.f32.mrf.mxu0 }
 0x104   :  { %1245 = vmatprep.mubr.msk.f32.mxu1 %vm338_vm0, %v310_v7  ;;  %v313_v12 = vmax.f32 %v1194_v9, 0.0 }
 0x105   :  { %v193_v10 = vpop.f32.mrf.mxu0  ;;  %1246 = vmatmul.mubr.msk.f32.gmra.mxu1 %vm338_vm0, %v311_v8 }
 0x106   :  { %v312_v11 = vmax.f32 %v193_v10, 0.0 }
 0x107   :  { %v1197_v13 = vpop.f32.mrf.mxu0 }
 0x108   :  { %1248 = vmatprep.mubr.msk.f32.mxu1 %vm338_vm0, %v312_v11  ;;  %v315_v16 = vmax.f32 %v1197_v13, 0.0 }
 0x109   :  { %v203_v14 = vpop.f32.mrf.mxu0  ;;  %1249 = vmatmul.mubr.msk.f32.gmra.mxu1 %vm338_vm0, %v313_v12 }
 0x10a   :  { %v314_v15 = vmax.f32 %v203_v14, 0.0 }
 0x10b   :  { %v1200_v17 = vpop.f32.mrf.mxu0 }
 0x10c   :  { %1251 = vmatprep.mubr.msk.f32.mxu1 %vm338_vm0, %v314_v15  ;;  %v317_v51 = vmax.f32 %v1200_v17, 0.0 }
 0x10d   :  { %v213_v49 = vpop.f32.mrf.mxu0  ;;  %1252 = vmatmul.mubr.msk.f32.gmra.mxu1 %vm338_vm0, %v315_v16 }
 0x10e   :  { %v316_v50 = vmax.f32 %v213_v49, 0.0 }
 0x10f   :  { %v1203_v52 = vpop.f32.mrf.mxu0 }
 0x110   :  { %1254 = vmatprep.mubr.msk.f32.mxu1 %vm338_vm0, %v316_v50  ;;  %v319_v55 = vmax.f32 %v1203_v52, 0.0 }
 0x111   :  { %v223_v53 = vpop.f32.mrf.mxu0  ;;  %1255 = vmatmul.mubr.msk.f32.gmra.mxu1 %vm338_vm0, %v317_v51 }
 0x112   :  { %v318_v54 = vmax.f32 %v223_v53, 0.0 }
 0x113   :  { %v1206_v56 = vpop.f32.mrf.mxu0 }
 0x114   :  { %1257 = vmatprep.mubr.msk.f32.mxu1 %vm338_vm0, %v318_v54  ;;  %v321_v59 = vmax.f32 %v1206_v56, 0.0 }
 0x115   :  { %v233_v57 = vpop.f32.mrf.mxu0  ;;  %1258 = vmatmul.mubr.msk.f32.gmra.mxu1 %vm338_vm0, %v319_v55 }
 0x116   :  { %v320_v58 = vmax.f32 %v233_v57, 0.0 }
 0x117   :  { %v1209_v60 = vpop.f32.mrf.mxu0 }
 0x118   :  { %1260 = vmatprep.mubr.msk.f32.mxu1 %vm338_vm0, %v320_v58  ;;  %v323_v63 = vmax.f32 %v1209_v60, 0.0 }
 0x119   :  { %v243_v61 = vpop.f32.mrf.mxu0  ;;  %1261 = vmatmul.mubr.msk.f32.gmra.mxu1 %vm338_vm0, %v321_v59 }
 0x11a   :  { %v322_v62 = vmax.f32 %v243_v61, 0.0 }
 0x11b   :  { %v1212_v0 = vpop.f32.mrf.mxu0 }
 0x11c   :  { %1263 = vmatprep.mubr.msk.f32.mxu1 %vm338_vm0, %v322_v62  ;;  %v325_v3 = vmax.f32 %v1212_v0, 0.0 }
 0x11d   :  { %v253_v1 = vpop.f32.mrf.mxu0  ;;  %1264 = vmatmul.mubr.msk.f32.gmra.mxu1 %vm338_vm0, %v323_v63 }
 0x11e   :  { %v324_v2 = vmax.f32 %v253_v1, 0.0 }
 0x11f   :  { %v1215_v5 = vpop.f32.mrf.mxu0 }
 0x120   :  { %1266 = vmatprep.mubr.msk.f32.mxu1 %vm338_vm0, %v324_v2  ;;  %v327_v8 = vmax.f32 %v1215_v5, 0.0 }
 0x121   :  { %v263_v6 = vpop.f32.mrf.mxu0  ;;  %1267 = vmatmul.mubr.msk.f32.gmra.mxu1 %vm338_vm0, %v325_v3 }
 0x122   :  { %v326_v7 = vmax.f32 %v263_v6, 0.0 }
 0x123   :  { %v1218_v9 = vpop.f32.mrf.mxu0 }
 0x124   :  { %1269 = vmatprep.mubr.msk.f32.mxu1 %vm338_vm0, %v326_v7  ;;  %v329_v12 = vmax.f32 %v1218_v9, 0.0 }
 0x125   :  { %v273_v10 = vpop.f32.mrf.mxu0  ;;  %1270 = vmatmul.mubr.msk.f32.gmra.mxu1 %vm338_vm0, %v327_v8 }
 0x126   :  { %v328_v11 = vmax.f32 %v273_v10, 0.0 }
 0x127   :  { %v1221_v13 = vpop.f32.mrf.mxu0 }
 0x128   :  { %1272 = vmatprep.mubr.msk.f32.mxu1 %vm338_vm0, %v328_v11  ;;  %v331_v16 = vmax.f32 %v1221_v13, 0.0 }
 0x129   :  { %v283_v14 = vpop.f32.mrf.mxu0  ;;  %1273 = vmatmul.mubr.msk.f32.gmra.mxu1 %vm338_vm0, %v329_v12 }
 0x12a   :  { %v330_v15 = vmax.f32 %v283_v14, 0.0 }
 0x12b   :  { %v1224_v17 = vpop.f32.mrf.mxu0 }
 0x12c   :  { %1275 = vmatprep.mubr.msk.f32.mxu1 %vm338_vm0, %v330_v15  ;;  %v333_v51 = vmax.f32 %v1224_v17, 0.0 }
 0x12d   :  { %v293_v49 = vpop.f32.mrf.mxu0  ;;  %1276 = vmatmul.mubr.msk.f32.gmra.mxu1 %vm338_vm0, %v331_v16 }
 0x12e   :  { %v332_v50 = vmax.f32 %v293_v49, 0.0 }
 0x130   :  { %1278 = vmatprep.mubr.msk.f32.mxu1 %vm338_vm0, %v332_v50 }
 0x131   :  { %1279 = vmatmul.mubr.msk.f32.gmra.mxu1 %vm338_vm0, %v333_v51 }
 0x1b5   :  { %v1235_v52 = vpop.f32.mrf.mxu1 }
 0x1b6   :  { %v661_v53 = vmax.f32 %v1235_v52, 0.0 }
 0x1b7   :  { %v501_v54 = vpop.f32.mrf.mxu1 }
 0x1b8   :  { %v1030_v55 = vmul.f32 -1.442695, %v661_v53  ;;  %v660_v56 = vmax.f32 %v501_v54, 0.0 }
 0x1b9   :  { %v1238_v57 = vpop.f32.mrf.mxu1 }
 0x1ba   :  { %1285 = vpow2.f32 %v1030_v55  ;;  %v1029_v58 = vmul.f32 -1.442695, %v660_v56  ;;  %v663_v59 = vmax.f32 %v1238_v57, 0.0 }
 0x1bb   :  { %v511_v60 = vpop.f32.mrf.mxu1 }
 0x1bc   :  { %1287 = vpow2.f32 %v1029_v58  ;;  %v1032_v61 = vmul.f32 -1.442695, %v663_v59  ;;  %v662_v62 = vmax.f32 %v511_v60, 0.0 }
 0x1bd   :  { %v1241_v63 = vpop.f32.mrf.mxu1 }
 0x1be   :  { %1289 = vpow2.f32 %v1032_v61  ;;  %v1031_v0 = vmul.f32 -1.442695, %v662_v62  ;;  %v665_v1 = vmax.f32 %v1241_v63, 0.0 }
 0x1bf   :  { %v521_v2 = vpop.f32.mrf.mxu1 }
 0x1c0   :  { %1291 = vpow2.f32 %v1031_v0  ;;  %v1034_v3 = vmul.f32 -1.442695, %v665_v1  ;;  %v664_v5 = vmax.f32 %v521_v2, 0.0 }
 0x1c1   :  { %v1244_v6 = vpop.f32.mrf.mxu1 }
 0x1c2   :  { %1293 = vpow2.f32 %v1034_v3  ;;  %v1033_v7 = vmul.f32 -1.442695, %v664_v5  ;;  %v667_v8 = vmax.f32 %v1244_v6, 0.0 }
 0x1c3   :  { %v531_v9 = vpop.f32.mrf.mxu1 }
 0x1c4   :  { %1295 = vpow2.f32 %v1033_v7  ;;  %v1036_v10 = vmul.f32 -1.442695, %v667_v8  ;;  %v666_v11 = vmax.f32 %v531_v9, 0.0 }
 0x1c5   :  { %v1247_v12 = vpop.f32.mrf.mxu1 }
 0x1c6   :  { %1297 = vpow2.f32 %v1036_v10  ;;  %v1035_v13 = vmul.f32 -1.442695, %v666_v11  ;;  %v669_v14 = vmax.f32 %v1247_v12, 0.0 }
 0x1c7   :  { %v1286_v15 = vpop.eup %1285  ;;  %v541_v16 = vpop.f32.mrf.mxu1 }
 0x1c8   :  { %v789_v17 = vadd.f32 1.0, %v1286_v15  ;;  %1299 = vpow2.f32 %v1035_v13  ;;  %v1038_v49 = vmul.f32 -1.442695, %v669_v14  ;;  %v668_v50 = vmax.f32 %v541_v16, 0.0 }
 0x1c9   :  { %v1288_v51 = vpop.eup %1287  ;;  %v1250_v52 = vpop.f32.mrf.mxu1  ;;  %v885_v14 = vmul.f32 10.0, %v1541_v18 }
 0x1ca   :  { %1301 = vrcp.f32 %v789_v17  ;;  %v788_v53 = vadd.f32 1.0, %v1288_v51  ;;  %v1037_v54 = vmul.f32 -1.442695, %v668_v50  ;;  %v671_v55 = vmax.f32 %v1250_v52, 0.0 }
 0x1cb   :  { %v1290_v56 = vpop.eup %1289  ;;  %1303 = vpow2.f32 %v1038_v49  ;;  %v551_v57 = vpop.f32.mrf.mxu1  ;;  %v884_v51 = vmul.f32 10.0, %v1499_v4 }
 0x1cc   :  { %1305 = vrcp.f32 %v788_v53  ;;  %v791_v58 = vadd.f32 1.0, %v1290_v56  ;;  %v1040_v59 = vmul.f32 -1.442695, %v671_v55  ;;  %v670_v60 = vmax.f32 %v551_v57, 0.0 }
 0x1cd   :  { %v1292_v61 = vpop.eup %1291  ;;  %1307 = vpow2.f32 %v1037_v54  ;;  %v1253_v62 = vpop.f32.mrf.mxu1  ;;  %v887_v57 = vmul.f32 10.0, %v1547_v20 }
 0x1ce   :  { %1309 = vrcp.f32 %v791_v58  ;;  %v790_v63 = vadd.f32 1.0, %v1292_v61  ;;  %v1039_v0 = vmul.f32 -1.442695, %v670_v60  ;;  %v673_v1 = vmax.f32 %v1253_v62, 0.0 }
 0x1cf   :  { %v1294_v2 = vpop.eup %1293  ;;  %1311 = vpow2.f32 %v1040_v59  ;;  %v561_v3 = vpop.f32.mrf.mxu1 }
 0x1d0   :  { %1313 = vrcp.f32 %v790_v63  ;;  %v793_v5 = vadd.f32 1.0, %v1294_v2  ;;  %v1042_v6 = vmul.f32 -1.442695, %v673_v1  ;;  %v672_v7 = vmax.f32 %v561_v3, 0.0 }
 0x1d1   :  { %v1296_v8 = vpop.eup %1295  ;;  %1315 = vpow2.f32 %v1039_v0  ;;  %v1256_v9 = vpop.f32.mrf.mxu1  ;;  %v886_v63 = vmul.f32 10.0, %v1543_v19 }
 0x1d2   :  { %1317 = vrcp.f32 %v793_v5  ;;  %v792_v10 = vadd.f32 1.0, %v1296_v8  ;;  %v1041_v11 = vmul.f32 -1.442695, %v672_v7  ;;  %v675_v12 = vmax.f32 %v1256_v9, 0.0 }
 0x1d3   :  { %v1298_v13 = vpop.eup %1297  ;;  %1319 = vpow2.f32 %v1042_v6  ;;  %v571_v15 = vpop.f32.mrf.mxu1  ;;  %v889_v6 = vmul.f32 10.0, %v1553_v22 }
 0x1d4   :  { %1321 = vrcp.f32 %v792_v10  ;;  %v795_v16 = vadd.f32 1.0, %v1298_v13  ;;  %v1044_v17 = vmul.f32 -1.442695, %v675_v12  ;;  %v674_v49 = vmax.f32 %v571_v15, 0.0 }
 0x1d5   :  { %v1300_v50 = vpop.eup %1299  ;;  %1323 = vpow2.f32 %v1041_v11  ;;  %v1259_v52 = vpop.f32.mrf.mxu1  ;;  %v888_v13 = vmul.f32 10.0, %v1549_v21 }
 0x1d6   :  { %1325 = vrcp.f32 %v795_v16  ;;  %v794_v53 = vadd.f32 1.0, %v1300_v50  ;;  %v1043_v54 = vmul.f32 -1.442695, %v674_v49  ;;  %v677_v55 = vmax.f32 %v1259_v52, 0.0 }
 0x1d7   :  { %v1302_v56 = vpop.eup %1301  ;;  %1327 = vpow2.f32 %v1044_v17  ;;  %v581_v18 = vpop.f32.mrf.mxu1 }
 0x1d8   :  { %v1304_v58 = vpop.eup %1303  ;;  %v917_v59 = vmul.f32 %v1302_v56, %v885_v14  ;;  %1329 = vrcp.f32 %v794_v53  ;;  %v1046_v60 = vmul.f32 -1.442695, %v677_v55  ;;  %v676_v61 = vmax.f32 %v581_v18, 0.0 }
 0x1d9   :  { %v1306_v62 = vpop.eup %1305  ;;  %v797_v4 = vadd.f32 1.0, %v1304_v58  ;;  %1331 = vpow2.f32 %v1043_v54  ;;  %v1262_v0 = vpop.f32.mrf.mxu1  ;;  %v890_v18 = vmul.f32 10.0, %v1555_v23 }
 0x1da   :  { %v1308_v1 = vpop.eup %1307  ;;  %949 = vst [vmem:[#allocation5 + $0x8] sm:$0xff] %v917_v59  ;;  %v916_v2 = vmul.f32 %v1306_v62, %v884_v51  ;;  %1333 = vpow2.f32 %v1046_v60  ;;  %v1045_v3 = vmul.f32 -1.442695, %v676_v61  ;;  %v679_v5 = vmax.f32 %v1262_v0, 0.0 }
 0x1db   :  { %v1310_v20 = vpop.eup %1309  ;;  %1335 = vrcp.f32 %v797_v4  ;;  %v796_v7 = vadd.f32 1.0, %v1308_v1  ;;  %v591_v8 = vpop.f32.mrf.mxu1  ;;  %v891_v51 = vmul.f32 10.0, %v1559_v24 }
 0x1dc   :  { %v1312_v9 = vpop.eup %1311  ;;  %948 = vst [vmem:[#allocation5] sm:$0xff] %v916_v2  ;;  %v919_v10 = vmul.f32 %v1310_v20, %v887_v57  ;;  %1337 = vpow2.f32 %v1045_v3  ;;  %v1048_v19 = vmul.f32 -1.442695, %v679_v5  ;;  %v678_v11 = vmax.f32 %v591_v8, 0.0 }
 0x1dd   :  { %v1314_v12 = vpop.eup %1313  ;;  %1339 = vrcp.f32 %v796_v7  ;;  %v799_v14 = vadd.f32 1.0, %v1312_v9  ;;  %v1265_v15 = vpop.f32.mrf.mxu1  ;;  %v893_v20 = vmul.f32 10.0, %v1565_v26 }
 0x1de   :  { %v1316_v16 = vpop.eup %1315  ;;  %951 = vst [vmem:[#allocation5 + $0x18] sm:$0xff] %v919_v10  ;;  %v918_v17 = vmul.f32 %v1314_v12, %v886_v63  ;;  %1341 = vpow2.f32 %v1048_v19  ;;  %v1047_v22 = vmul.f32 -1.442695, %v678_v11  ;;  %v681_v49 = vmax.f32 %v1265_v15, 0.0 }
 0x1df   :  { %v1318_v50 = vpop.eup %1317  ;;  %1343 = vrcp.f32 %v799_v14  ;;  %v798_v52 = vadd.f32 1.0, %v1316_v16  ;;  %v601_v53 = vpop.f32.mrf.mxu1  ;;  %v892_v12 = vmul.f32 10.0, %v1561_v25 }
 0x1e0   :  { %v1320_v54 = vpop.eup %1319  ;;  %950 = vst [vmem:[#allocation5 + $0x10] sm:$0xff] %v918_v17  ;;  %v921_v55 = vmul.f32 %v1318_v50, %v889_v6  ;;  %1345 = vpow2.f32 %v1047_v22  ;;  %v1050_v21 = vmul.f32 -1.442695, %v681_v49  ;;  %v680_v56 = vmax.f32 %v601_v53, 0.0 }
 0x1e1   :  { %v1322_v57 = vpop.eup %1321  ;;  %1347 = vrcp.f32 %v798_v52  ;;  %v801_v58 = vadd.f32 1.0, %v1320_v54  ;;  %v1268_v59 = vpop.f32.mrf.mxu1  ;;  %v895_v49 = vmul.f32 10.0, %v1571_v28 }
 0x1e2   :  { %v1324_v60 = vpop.eup %1323  ;;  %953 = vst [vmem:[#allocation5 + $0x28] sm:$0xff] %v921_v55  ;;  %v920_v61 = vmul.f32 %v1322_v57, %v888_v13  ;;  %1349 = vpow2.f32 %v1050_v21  ;;  %v1049_v24 = vmul.f32 -1.442695, %v680_v56  ;;  %v683_v62 = vmax.f32 %v1268_v59, 0.0 }
 0x1e3   :  { %v1326_v63 = vpop.eup %1325  ;;  %1351 = vrcp.f32 %v801_v58  ;;  %v800_v4 = vadd.f32 1.0, %v1324_v60  ;;  %v611_v0 = vpop.f32.mrf.mxu1  ;;  %v894_v21 = vmul.f32 10.0, %v1567_v27 }
 0x1e4   :  { %v1328_v1 = vpop.eup %1327  ;;  %952 = vst [vmem:[#allocation5 + $0x20] sm:$0xff] %v920_v61  ;;  %v923_v2 = vmul.f32 %v1326_v63, %v891_v51  ;;  %1353 = vpow2.f32 %v1049_v24  ;;  %v1052_v3 = vmul.f32 -1.442695, %v683_v62  ;;  %v682_v5 = vmax.f32 %v611_v0, 0.0 }
 0x1e5   :  { %v1330_v23 = vpop.eup %1329  ;;  %1355 = vrcp.f32 %v800_v4  ;;  %v803_v6 = vadd.f32 1.0, %v1328_v1  ;;  %v1271_v7 = vpop.f32.mrf.mxu1  ;;  %v897_v61 = vmul.f32 10.0, %v1577_v30 }
 0x1e6   :  { %v1332_v8 = vpop.eup %1331  ;;  %955 = vst [vmem:[#allocation5 + $0x38] sm:$0xff] %v923_v2  ;;  %v922_v9 = vmul.f32 %v1330_v23, %v890_v18  ;;  %1357 = vpow2.f32 %v1052_v3  ;;  %v1051_v10 = vmul.f32 -1.442695, %v682_v5  ;;  %v685_v19 = vmax.f32 %v1271_v7, 0.0 }
 0x1e7   :  { %v1334_v11 = vpop.eup %1333  ;;  %1359 = vrcp.f32 %v803_v6  ;;  %v802_v13 = vadd.f32 1.0, %v1332_v8  ;;  %v621_v14 = vpop.f32.mrf.mxu1  ;;  %v896_v2 = vmul.f32 10.0, %v1573_v29  ;;  %v899_v8 = vmul.f32 10.0, %v1583_v32 }
 0x1e8   :  { %v1336_v15 = vpop.eup %1335  ;;  %954 = vst [vmem:[#allocation5 + $0x30] sm:$0xff] %v922_v9  ;;  %v805_v16 = vadd.f32 1.0, %v1334_v11  ;;  %1361 = vpow2.f32 %v1051_v10  ;;  %v1054_v26 = vmul.f32 -1.442695, %v685_v19  ;;  %v684_v17 = vmax.f32 %v621_v14, 0.0 }
 0x1e9   :  { %v1338_v22 = vpop.eup %1337  ;;  %v925_v50 = vmul.f32 %v1336_v15, %v893_v20  ;;  %1363 = vrcp.f32 %v802_v13  ;;  %v1274_v51 = vpop.f32.mrf.mxu1  ;;  %v898_v14 = vmul.f32 10.0, %v1579_v31  ;;  %v901_v15 = vmul.f32 10.0, %v1589_v34 }
 0x1ea   :  { %v1340_v52 = vpop.eup %1339  ;;  %1365 = vrcp.f32 %v805_v16  ;;  %v804_v53 = vadd.f32 1.0, %v1338_v22  ;;  %v1053_v54 = vmul.f32 -1.442695, %v684_v17  ;;  %v687_v25 = vmax.f32 %v1274_v51, 0.0 }
 0x1eb   :  { %v1342_v55 = vpop.eup %1341  ;;  %957 = vst [vmem:[#allocation5 + $0x48] sm:$0xff] %v925_v50  ;;  %v924_v56 = vmul.f32 %v1340_v52, %v892_v12  ;;  %1367 = vpow2.f32 %v1054_v26  ;;  %v631_v57 = vpop.f32.mrf.mxu1 }
 0x1ec   :  { %v1344_v18 = vpop.eup %1343  ;;  %1369 = vrcp.f32 %v804_v53  ;;  %v807_v58 = vadd.f32 1.0, %v1342_v55  ;;  %v1056_v59 = vmul.f32 -1.442695, %v687_v25  ;;  %v686_v28 = vmax.f32 %v631_v57, 0.0 }
 0x1ed   :  { %v1346_v60 = vpop.eup %1345  ;;  %956 = vst [vmem:[#allocation5 + $0x40] sm:$0xff] %v924_v56  ;;  %v927_v24 = vmul.f32 %v1344_v18, %v895_v49  ;;  %1371 = vpow2.f32 %v1053_v54  ;;  %v1277_v62 = vpop.f32.mrf.mxu1  ;;  %v900_v53 = vmul.f32 10.0, %v1585_v33 }
 0x1ee   :  { %v1348_v63 = vpop.eup %1347  ;;  %1373 = vrcp.f32 %v807_v58  ;;  %v806_v4 = vadd.f32 1.0, %v1346_v60  ;;  %v1055_v27 = vmul.f32 -1.442695, %v686_v28  ;;  %v689_v0 = vmax.f32 %v1277_v62, 0.0 }
 0x1ef   :  { %v1350_v1 = vpop.eup %1349  ;;  %959 = vst [vmem:[#allocation5 + $0x58] sm:$0xff] %v927_v24  ;;  %v926_v3 = vmul.f32 %v1348_v63, %v894_v21  ;;  %1375 = vpow2.f32 %v1056_v59  ;;  %v641_v5 = vpop.f32.mrf.mxu1  ;;  %v903_v21 = vmul.f32 10.0, %v1595_v36  ;;  %v902_v59 = vmul.f32 10.0, %v1591_v35 }
 0x1f0   :  { %v1352_v23 = vpop.eup %1351  ;;  %1377 = vrcp.f32 %v806_v4  ;;  %v809_v20 = vadd.f32 1.0, %v1350_v1  ;;  %v1058_v30 = vmul.f32 -1.442695, %v689_v0  ;;  %v688_v6 = vmax.f32 %v641_v5, 0.0 }
 0x1f1   :  { %v1354_v7 = vpop.eup %1353  ;;  %958 = vst [vmem:[#allocation5 + $0x50] sm:$0xff] %v926_v3  ;;  %v929_v9 = vmul.f32 %v1352_v23, %v897_v61  ;;  %1379 = vpow2.f32 %v1055_v27  ;;  %v1280_v10 = vpop.f32.mrf.mxu1  ;;  %v905_v24 = vmul.f32 10.0, %v1601_v38  ;;  %v904_v27 = vmul.f32 10.0, %v1597_v37 }
 0x1f2   :  { %v1356_v19 = vpop.eup %1355  ;;  %1381 = vrcp.f32 %v809_v20  ;;  %v808_v11 = vadd.f32 1.0, %v1354_v7  ;;  %v1057_v29 = vmul.f32 -1.442695, %v688_v6  ;;  %v691_v12 = vmax.f32 %v1280_v10, 0.0 }
 0x1f3   :  { %v1358_v13 = vpop.eup %1357  ;;  %961 = vst [vmem:[#allocation5 + $0x68] sm:$0xff] %v929_v9  ;;  %v928_v16 = vmul.f32 %v1356_v19, %v896_v2  ;;  %1383 = vpow2.f32 %v1058_v30  ;;  %v651_v26 = vpop.f32.mrf.mxu1  ;;  %v907_v3 = vmul.f32 10.0, %v1607_v40  ;;  %v906_v30 = vmul.f32 10.0, %v1603_v39 }
 0x1f4   :  { %v1360_v17 = vpop.eup %1359  ;;  %1385 = vrcp.f32 %v808_v11  ;;  %v811_v32 = vadd.f32 1.0, %v1358_v13  ;;  %v1060_v22 = vmul.f32 -1.442695, %v691_v12  ;;  %v690_v49 = vmax.f32 %v651_v26, 0.0 }
 0x1f5   :  { %v1362_v50 = vpop.eup %1361  ;;  %960 = vst [vmem:[#allocation5 + $0x60] sm:$0xff] %v928_v16  ;;  %v931_v51 = vmul.f32 %v1360_v17, %v899_v8  ;;  %1387 = vpow2.f32 %v1057_v29  ;;  %v909_v19 = vmul.f32 10.0, %v1613_v42  ;;  %v908_v12 = vmul.f32 10.0, %v1609_v41 }
 0x1f6   :  { %v1364_v52 = vpop.eup %1363  ;;  %1389 = vrcp.f32 %v811_v32  ;;  %v810_v31 = vadd.f32 1.0, %v1362_v50  ;;  %v1059_v54 = vmul.f32 -1.442695, %v690_v49  ;;  %v910_v26 = vmul.f32 10.0, %v1615_v43 }
 0x1f7   :  { %v1366_v34 = vpop.eup %1365  ;;  %963 = vst [vmem:[#allocation5 + $0x78] sm:$0xff] %v931_v51  ;;  %v930_v25 = vmul.f32 %v1364_v52, %v898_v14  ;;  %1391 = vpow2.f32 %v1060_v22  ;;  %v911_v14 = vmul.f32 10.0, %v1619_v44  ;;  %v913_v32 = vmul.f32 10.0, %v1625_v46 }
 0x1f8   :  { %v1368_v55 = vpop.eup %1367  ;;  %v933_v56 = vmul.f32 %v1366_v34, %v901_v15  ;;  %1393 = vrcp.f32 %v810_v31  ;;  %v912_v41 = vmul.f32 10.0, %v1621_v45  ;;  %v915_v44 = vmul.f32 10.0, %v1631_v48 }
 0x1f9   :  { %v1370_v57 = vpop.eup %1369  ;;  %962 = vst [vmem:[#allocation5 + $0x70] sm:$0xff] %v930_v25  ;;  %v813_v18 = vadd.f32 1.0, %v1368_v55  ;;  %1395 = vpow2.f32 %v1059_v54  ;;  %v914_v43 = vmul.f32 10.0, %v1627_v47 }
 0x1fa   :  { %v1372_v58 = vpop.eup %1371  ;;  %965 = vst [vmem:[#allocation5 + $0x88] sm:$0xff] %v933_v56  ;;  %v932_v33 = vmul.f32 %v1370_v57, %v900_v53 }
 0x1fb   :  { %v1374_v28 = vpop.eup %1373  ;;  %1397 = vrcp.f32 %v813_v18  ;;  %v812_v60 = vadd.f32 1.0, %v1372_v58 }
 0x1fc   :  { %v1376_v61 = vpop.eup %1375  ;;  %964 = vst [vmem:[#allocation5 + $0x80] sm:$0xff] %v932_v33  ;;  %v935_v62 = vmul.f32 %v1374_v28, %v903_v21 }
 0x1fd   :  { %v1378_v36 = vpop.eup %1377  ;;  %1399 = vrcp.f32 %v812_v60  ;;  %v815_v63 = vadd.f32 1.0, %v1376_v61 }
 0x1fe   :  { %v1380_v4 = vpop.eup %1379  ;;  %967 = vst [vmem:[#allocation5 + $0x98] sm:$0xff] %v935_v62  ;;  %v934_v0 = vmul.f32 %v1378_v36, %v902_v59 }
 0x1ff   :  { %v1382_v1 = vpop.eup %1381  ;;  %1401 = vrcp.f32 %v815_v63  ;;  %v814_v35 = vadd.f32 1.0, %v1380_v4 }
 0x200   :  { %v1384_v2 = vpop.eup %1383  ;;  %966 = vst [vmem:[#allocation5 + $0x90] sm:$0xff] %v934_v0  ;;  %v937_v5 = vmul.f32 %v1382_v1, %v905_v24 }
 0x201   :  { %v1386_v23 = vpop.eup %1385  ;;  %1403 = vrcp.f32 %v814_v35  ;;  %v817_v38 = vadd.f32 1.0, %v1384_v2 }
 0x202   :  { %v1388_v20 = vpop.eup %1387  ;;  %969 = vst [vmem:[#allocation5 + $0xa8] sm:$0xff] %v937_v5  ;;  %v936_v6 = vmul.f32 %v1386_v23, %v904_v27 }
 0x203   :  { %v1390_v7 = vpop.eup %1389  ;;  %1405 = vrcp.f32 %v817_v38  ;;  %v816_v37 = vadd.f32 1.0, %v1388_v20 }
 0x204   :  { %v1392_v8 = vpop.eup %1391  ;;  %968 = vst [vmem:[#allocation5 + $0xa0] sm:$0xff] %v936_v6  ;;  %v939_v9 = vmul.f32 %v1390_v7, %v907_v3 }
 0x205   :  { %v1394_v10 = vpop.eup %1393  ;;  %1407 = vrcp.f32 %v816_v37  ;;  %v819_v40 = vadd.f32 1.0, %v1392_v8 }
 0x206   :  { %v1396_v11 = vpop.eup %1395  ;;  %971 = vst [vmem:[#allocation5 + $0xb8] sm:$0xff] %v939_v9  ;;  %v938_v29 = vmul.f32 %v1394_v10, %v906_v30 }
 0x207   :  { %1409 = vrcp.f32 %v819_v40  ;;  %v818_v39 = vadd.f32 1.0, %v1396_v11 }
 0x208   :  { %v1398_v13 = vpop.eup %1397  ;;  %970 = vst [vmem:[#allocation5 + $0xb0] sm:$0xff] %v938_v29 }
 0x209   :  { %v941_v15 = vmul.f32 %v1398_v13, %v909_v19  ;;  %1411 = vrcp.f32 %v818_v39 }
 0x20a   :  { %v1400_v16 = vpop.eup %1399 }
 0x20b   :  { %973 = vst [vmem:[#allocation5 + $0xc8] sm:$0xff] %v941_v15  ;;  %v940_v42 = vmul.f32 %v1400_v16, %v908_v12 }
 0x20c   :  { %v1402_v17 = vpop.eup %1401 }
 0x20d   :  { %972 = vst [vmem:[#allocation5 + $0xc0] sm:$0xff] %v940_v42  ;;  %v943_v22 = vmul.f32 %v1402_v17, %v911_v14 }
 0x20e   :  { %v1404_v49 = vpop.eup %1403 }
 0x20f   :  { %975 = vst [vmem:[#allocation5 + $0xd8] sm:$0xff] %v943_v22  ;;  %v942_v50 = vmul.f32 %v1404_v49, %v910_v26 }
 0x210   :  { %v1406_v51 = vpop.eup %1405 }
 0x211   :  { %974 = vst [vmem:[#allocation5 + $0xd0] sm:$0xff] %v942_v50  ;;  %v945_v52 = vmul.f32 %v1406_v51, %v913_v32 }
 0x212   :  { %v1408_v53 = vpop.eup %1407 }
 0x213   :  { %977 = vst [vmem:[#allocation5 + $0xe8] sm:$0xff] %v945_v52  ;;  %v944_v31 = vmul.f32 %v1408_v53, %v912_v41 }
 0x214   :  { %v1410_v54 = vpop.eup %1409 }
 0x215   :  { %976 = vst [vmem:[#allocation5 + $0xe0] sm:$0xff] %v944_v31  ;;  %v947_v46 = vmul.f32 %v1410_v54, %v915_v44 }
 0x216   :  { %v1412_v34 = vpop.eup %1411 }
 0x217   :  { %979 = vst [vmem:[#allocation5 + $0xf8] sm:$0xff] %v947_v46  ;;  %v946_v45 = vmul.f32 %v1412_v34, %v914_v43 }
 0x219   :  { %978 = vst [vmem:[#allocation5 + $0xf0] sm:$0xff] %v946_v45 }
 0x21a   :  { %1444 = shalt.err (!%p1441_p9)
}
 0x21b   :  { %991 = dma.vmem_to_hbm [thread:$0]  %s986_s4, 4096, %s1716_s3, [#allocation4], %s1458_s15, %s1458_s15, %s1459_s16  }
 0x21c   :  { %1455 = dma.done.wait [#allocation4], 4096  }
 0x21d   :  { %1456 = vsyncadd [#allocation4], 4294963200 }
 0x21e   :  { %995 = vsyncpa [#allocation3], 1 }
 0x21f   :  { %996 = vsyncpa [#allocation4], 1 }

</bundles_post_ra>
